<compile_context>
chip_gen: v7x
topology: tpu7x:2x2x1
jax: 0.10.0
libtpu: 0.0.40
codegen_flags: <defaults>
</compile_context>

<pallas_src>
import jax
import jax.numpy as jnp
from jax.experimental import pallas as pl
from jax.experimental.pallas import tpu as pltpu

_EPS = 1e-12  # matches torch.nn.functional.normalize default eps


def _round_up(x, m):
    return ((x + m - 1) // m) * m


def _labeler_kernel(f_ref, ckn_ref, cls_ref, out_ref):
    # f_ref:   [TILE_N, D]     raw features (compute dtype, un-normalized on purpose)
    # ckn_ref: [D, C]          L2-normalized prototypes (selected + transposed), resident
    # cls_ref: [1, C]  int32   current_classes ids, resident
    # out_ref: [1, 1, TILE_N]  int32 predicted class ids (lane-dense)
    sims = jnp.dot(f_ref[...], ckn_ref[...],
                   preferred_element_type=jnp.float32)            # [TILE_N, C] on the MXU
    tn, c = sims.shape

    # First-occurrence argmax over classes (matches torch / jnp.argmax tie-break).
    col = jax.lax.broadcasted_iota(jnp.int32, (tn, c), 1)
    max_val = jnp.max(sims, axis=1, keepdims=True)
    is_max = sims >= max_val
    cand = jnp.where(is_max, col, jnp.int32(c))                   # non-max -> sentinel c
    arg = jnp.min(cand, axis=1, keepdims=True)                    # [TILE_N, 1]

    # Fused remap: argmax index -> actual class id (exactly one match per row).
    cls_b = jnp.broadcast_to(cls_ref[...], (tn, c))               # [TILE_N, C] int32
    sentinel = jnp.iinfo(jnp.int32).max
    picked = jnp.where(col == arg, cls_b, sentinel)
    preds = jnp.min(picked, axis=1, keepdims=True)                # [TILE_N, 1] class ids

    # Lane-dense store: relayout the per-row scalars onto lanes and write unmasked.
    out_ref[...] = jnp.transpose(preds).reshape(1, 1, tn)


def _prepare_prototypes(ck, current_classes, dtype):
    """Init-time glue from __init__: normalize, select current classes, transpose."""
    ck = ck.astype(jnp.float32)
    ck_n = ck / jnp.maximum(jnp.sqrt(jnp.sum(ck * ck, axis=1, keepdims=True)), _EPS)
    return ck_n[current_classes].T.astype(dtype)                  # [D, C]


def online_labeler_forward(features, ck, current_classes, *,
                           tile_n=512, compute_dtype=jnp.bfloat16):
    """features: [N, D]; ck: [K, D]; current_classes: [C] int. Returns [N] int32."""
    current_classes = current_classes.astype(jnp.int32)
    ck_sel_t = _prepare_prototypes(ck, current_classes, compute_dtype)   # [D, C]

    n, d = features.shape
    c = ck_sel_t.shape[1]

    # L2-normalizing the feature rows is unnecessary for the argmax (positive scale).
    f = features.astype(compute_dtype)

    # Row tile: multiple of 8 sublanes; pad N so the grid divides evenly.
    # Padded rows produce garbage predictions that are sliced off below.
    tile = max(8, min(int(tile_n), _round_up(n, 8)))
    n_pad = _round_up(n, tile)
    if n_pad != n:
        f = jnp.pad(f, ((0, n_pad - n), (0, 0)))
    num_tiles = n_pad // tile

    cls2d = current_classes.reshape(1, c)

    out = pl.pallas_call(
        _labeler_kernel,
        out_shape=jax.ShapeDtypeStruct((num_tiles, 1, tile), jnp.int32),
        grid_spec=pltpu.PrefetchScalarGridSpec(
            num_scalar_prefetch=0,
            grid=(num_tiles,),
            in_specs=[
                pl.BlockSpec((tile, d), lambda i: (i, 0)),    # streamed feature rows
                pl.BlockSpec((d, c), lambda i: (0, 0)),       # resident prototypes
                pl.BlockSpec((1, c), lambda i: (0, 0)),       # resident class ids
            ],
            out_specs=pl.BlockSpec((1, 1, tile), lambda i: (i, 0, 0)),
        ),
        compiler_params=pltpu.CompilerParams(
            dimension_semantics=("parallel",)),
    )(f, ck_sel_t, cls2d)

    return out.reshape(n_pad)[:n]


def _reference(features, ck_norm_t, current_classes):
    """Pure-JAX replica of OnlineLabeler.forward given the stored ck_norm [D, C]."""
    f = features.astype(jnp.float32)
    f_n = f / jnp.maximum(jnp.sqrt(jnp.sum(f * f, axis=1, keepdims=True)), _EPS)
    sims = f_n @ ck_norm_t.astype(jnp.float32)
    return current_classes[jnp.argmax(sims, axis=1)].astype(jnp.int32)
    # TODO(synk): the PyTorch module's trailing .cuda() device move has no TPU meaning.


if __name__ == "__main__":
    key = jax.random.PRNGKey(0)
    k1, k2 = jax.random.split(key)

    N, D, K = 8, 32, 10                                         # samples, feat dim, classes
    current_classes = jnp.array([1, 3, 5, 8], dtype=jnp.int32)  # C = 4

    # bf16 model precision (what the kernel feeds the MXU); prototypes stored in f32.
    features = jax.random.normal(k1, (N, D), dtype=jnp.float32).astype(jnp.bfloat16)
    ck = jax.random.normal(k2, (K, D), dtype=jnp.float32)

    preds = online_labeler_forward(features, ck, current_classes,
                                   tile_n=512, compute_dtype=jnp.bfloat16)
    jax.block_until_ready(preds)

    # Reference uses the same stored (bf16) prototype matrix so the comparison is exact.
    ck_norm_t = _prepare_prototypes(ck, current_classes, jnp.bfloat16)
    ref = _reference(features, ck_norm_t, current_classes)

    assert preds.shape == (N,), preds.shape
    assert preds.dtype == jnp.int32, preds.dtype
    assert jnp.array_equal(preds, ref), (preds, ref)

    print("KERNEL_OK")
</pallas_src>

<mosaic_0001>
module attributes {stable_mosaic.version = 11 : i64} {
  func.func @_labeler_kernel(%arg0: i32, %arg1: memref<8x32xbf16, #tpu.memory_space<vmem>>, %arg2: memref<32x4xbf16, #tpu.memory_space<vmem>>, %arg3: memref<1x4xi32, #tpu.memory_space<vmem>>, %arg4: memref<1x1x8xi32, #tpu.memory_space<vmem>>) attributes {dimension_semantics = [#tpu.dimension_semantics<parallel>], iteration_bounds = array<i64: 1>, scalar_prefetch = 0 : i64, scratch_operands = 0 : i64, tpu.core_type = #tpu.core_type<tc>, window_params = [{transform_indices = @transform_0, window_bounds = array<i64: 8, 32>}, {pipeline_mode = #tpu.pipeline_mode<synchronous>, transform_indices = @transform_1, window_bounds = array<i64: 32, 4>}, {pipeline_mode = #tpu.pipeline_mode<synchronous>, transform_indices = @transform_2, window_bounds = array<i64: 1, 4>}, {transform_indices = @transform_3, window_bounds = array<i64: 1, 1, 8>}]} {
    %c0 = arith.constant 0 : index
    %c0_0 = arith.constant 0 : index
    %0 = vector.load %arg1[%c0, %c0_0] : memref<8x32xbf16, #tpu.memory_space<vmem>>, vector<8x32xbf16>
    %c0_1 = arith.constant 0 : index
    %c0_2 = arith.constant 0 : index
    %1 = vector.load %arg2[%c0_1, %c0_2] : memref<32x4xbf16, #tpu.memory_space<vmem>>, vector<32x4xbf16>
    %cst = arith.constant dense<0.000000e+00> : vector<8x4xf32>
    %2 = tpu.matmul %0, %1, %cst {dimension_numbers = #tpu.dot_dimension_numbers<[1], [0], [0], [1], [0, 0, 1, 1], [], []>} : vector<8x32xbf16>, vector<32x4xbf16>, vector<8x4xf32> -> vector<8x4xf32>
    %3 = tpu.iota {dimensions = array<i32: 1>} : vector<8x4xi32>
    %cst_3 = arith.constant dense<0xFF800000> : vector<8xf32>
    %4 = vector.multi_reduction <maximumf>, %2, %cst_3 [1] : vector<8x4xf32> to vector<8xf32>
    %5 = vector.shape_cast %4 : vector<8xf32> to vector<8x1xf32>
    %6 = vector.broadcast %5 : vector<8x1xf32> to vector<8x4xf32>
    %7 = arith.cmpf oge, %2, %6 : vector<8x4xf32>
    %c4_i32 = arith.constant 4 : i32
    %8 = vector.broadcast %c4_i32 : i32 to vector<8x4xi32>
    %9 = arith.select %7, %3, %8 : vector<8x4xi1>, vector<8x4xi32>
    %cst_4 = arith.constant dense<2147483647> : vector<8xi32>
    %10 = vector.multi_reduction <minsi>, %9, %cst_4 [1] : vector<8x4xi32> to vector<8xi32>
    %11 = vector.shape_cast %10 : vector<8xi32> to vector<8x1xi32>
    %c0_5 = arith.constant 0 : index
    %c0_6 = arith.constant 0 : index
    %12 = vector.load %arg3[%c0_5, %c0_6] : memref<1x4xi32, #tpu.memory_space<vmem>>, vector<1x4xi32>
    %13 = vector.shape_cast %12 : vector<1x4xi32> to vector<1x4xi32>
    %14 = vector.broadcast %13 : vector<1x4xi32> to vector<8x4xi32>
    %15 = vector.broadcast %11 : vector<8x1xi32> to vector<8x4xi32>
    %16 = arith.cmpi eq, %3, %15 : vector<8x4xi32>
    %c2147483647_i32 = arith.constant 2147483647 : i32
    %17 = vector.broadcast %c2147483647_i32 : i32 to vector<8x4xi32>
    %18 = arith.select %16, %14, %17 : vector<8x4xi1>, vector<8x4xi32>
    %cst_7 = arith.constant dense<2147483647> : vector<8xi32>
    %19 = vector.multi_reduction <minsi>, %18, %cst_7 [1] : vector<8x4xi32> to vector<8xi32>
    %20 = vector.shape_cast %19 : vector<8xi32> to vector<8x1xi32>
    %21 = tpu.transpose %20, [1, 0] : vector<8x1xi32> -> vector<1x8xi32>
    %22 = vector.shape_cast %21 : vector<1x8xi32> to vector<1x1x8xi32>
    %c0_8 = arith.constant 0 : index
    %c0_9 = arith.constant 0 : index
    %c0_10 = arith.constant 0 : index
    %23 = vector.load %arg4[%c0_8, %c0_9, %c0_10] : memref<1x1x8xi32, #tpu.memory_space<vmem>>, vector<1x1x8xi32>
    tpu.vector_store %arg4[%c0_8, %c0_9, %c0_10], %22 {strides = array<i32>} : memref<1x1x8xi32, #tpu.memory_space<vmem>>, vector<1x1x8xi32>,
    return
  }
  func.func @transform_0(%arg0: i32) -> (i32, i32) {
    %c0_i32 = arith.constant 0 : i32
    %c0_i32_0 = arith.constant 0 : i32
    return %arg0, %c0_i32 : i32, i32
  }
  func.func @transform_1(%arg0: i32) -> (i32, i32) {
    %c0_i32 = arith.constant 0 : i32
    %c0_i32_0 = arith.constant 0 : i32
    %c0_i32_1 = arith.constant 0 : i32
    return %c0_i32, %c0_i32_0 : i32, i32
  }
  func.func @transform_2(%arg0: i32) -> (i32, i32) {
    %c0_i32 = arith.constant 0 : i32
    %c0_i32_0 = arith.constant 0 : i32
    %c0_i32_1 = arith.constant 0 : i32
    return %c0_i32, %c0_i32_0 : i32, i32
  }
  func.func @transform_3(%arg0: i32) -> (i32, i32, i32) {
    %c0_i32 = arith.constant 0 : i32
    %c0_i32_0 = arith.constant 0 : i32
    %c0_i32_1 = arith.constant 0 : i32
    return %arg0, %c0_i32, %c0_i32_0 : i32, i32, i32
  }
}

</mosaic_0001>

<bundles_post_ra>
// kernel: tpu_custom_call.1
= control target key start
LH: loop header
LB: loop body
LE: loop exit
PB: predicated region body
PF: predicated region fallthrough
CT: control target
= control target key end

     0   :  { %v215_v1 = vmov 0.0   ;;  %vm216_vm0 = vmmov 0   ;;  %s265_s0 = inlined_call_operand.vmem [shape: bf16[8,32], index: 0, kind: input, shape index: {}]   ;;  %s266_s1 = inlined_call_operand.vmem [shape: bf16[32,4], index: 1, kind: input, shape index: {}]   ;;  %s267_s2 = inlined_call_operand.vmem [shape: s32[1,4], index: 2, kind: input, shape index: {}]   ;;  %s268_s3 = inlined_call_operand.hbm [shape: s32[1,1,8], index: 3, kind: output, shape index: {}]  }
   0x1   :  { %v189_v0 = vld [vmem:[%s266_s1] sm:$0xff]   ;;  %177 = vmatprep.subr.bf16.mxu0 %v215_v1  ;;  %v190_v2 = vld [vmem:[%s266_s1 + $0x8] sm:$0xff]   ;;  %181 = vmatprep.mubr.msk.bf16.mxu0 %vm216_vm0, %v215_v1 }
   0x2   :  { %178 = vmatpush3.bf16.msra.mxu0 %v189_v0 }
   0x3   :  { %8 = vsyncpa [#allocation3], 0  ;;  %179 = vmatprep.subr.bf16.mxu0 %v215_v1  ;;  %v16_v3 = vld [vmem:[%s265_s0] sm:$0xf]  ;;  %vm33_vm1 = vcmask 261120   ;;  %vm79_vm2 = vcmask 31744   ;;  %v77_v9 = vlaneseq }
   0x4   :  { %v173_v25 = vld [vmem:[%s267_s2] ss:$0 sm:$0xff]  ;;  %s217_s2 = smov [#allocation2]   ;;  %vm154_vm7 = vcmask 57344  }
   0x5   :  { %v78_v10 = vand.u32 127, %v77_v9  ;;  %s162_s18 = sshll.u32 %s217_s2, 4  ;;  %s163_s18 = int_to_ptr.vmem [resolvable:$true] %s162_s18 }
   0x6   :  { %180 = vmatpush3.bf16.msra.mxu0 %v190_v2  ;;  %s191_s19 = scalar_lea.vmem %s163_s18, 16  ;;  %s195_s20 = scalar_lea.vmem %s163_s18, 32 }
   0x7   :  { %p192_p0 = scmp.ne.s32.totalorder %s163_s18, %s191_s19  ;;  %p196_p1 = scmp.lt.s32.totalorder %s163_s18, %s163_s18 }
   0x8   :  { %p197_p2 = scmp.lt.s32.totalorder %s195_s20, %s191_s19 }
   0x9   :  { %182 = vmatmul.mubr.msk.bf16.vlgmr.msra.gmra.mrb[0].mxu0 %vm33_vm1, %v16_v3 }
   0xa   :  { %p198_p3 = por %p197_p2, %p196_p1 }
   0xc   :  { %p199_p4 = pnand %p198_p3, %p192_p0 }
  0xdc   :  { %v71_v4 = vpop.f32.mrb[0].mxu0 }
  0xdd   :  { %v183_v5 = vpop.f32.mrb[1].mxu0  ;;  %v80_v6 = vsel %vm79_vm2, %v71_v4, -inf }
  0xde   :  { %81 = vmax.xlane.f32.xlu0 %v80_v6  ;;  %v74_v7 = vpop.f32.mrb[2].mxu0 }
  0xdf   :  { %v184_v8 = vpop.f32.mrb[3].mxu0 }
 0x16b   :  { %v82_v11 = vpop.xlane.xlu0 %81 }
 0x16c   :  { %vm83_vm3 = vcmp.ge.f32.partialorder %v71_v4, %v82_v11 }
 0x16d   :  { %v84_v12 = vsel %vm83_vm3, %v78_v10, 4 }
 0x16e   :  { %v85_v13 = vsel %vm79_vm2, %v84_v12, 2147483647 }
 0x16f   :  { %v87_v14 = vshra.s32 %v85_v13, 16  ;;  %v86_v16 = vand.u32 65535, %v85_v13 }
 0x171   :  { %v89_v15 = vcvt.s32.f32 %v87_v14  ;;  %v88_v18 = vcvt.s32.f32 %v86_v16 }
 0x173   :  { %90 = vmin.xlane.f32.xlu0 %v89_v15 }
 0x200   :  { %v91_v17 = vpop.xlane.xlu0 %90 }
 0x201   :  { %vm92_vm4 = vcmp.eq.f32.partialorder %v89_v15, %v91_v17  ;;  %v97_v20 = vcvt.f32.s32 %v91_v17 }
 0x202   :  { %v93_v19 = vsel %vm92_vm4, %v88_v18, inf }
 0x203   :  { %94 = vmin.xlane.f32.xlu1 %v93_v19  ;;  %v98_v22 = vshll.u32 %v97_v20, 16 }
 0x290   :  { %v95_v21 = vpop.xlane.xlu1 %94 }
 0x291   :  { %v96_v23 = vcvt.f32.s32 %v95_v21 }
 0x293   :  { %v99_v24 = vadd.s32 %v98_v22, %v96_v23 }
 0x295   :  { %vm105_vm5 = vcmp.eq.s32.totalorder %v78_v10, %v99_v24 }
 0x296   :  { %v106_v26 = vsel %vm105_vm5, %v173_v25, 2147483647 }
 0x297   :  { %v107_v27 = vsel %vm79_vm2, %v106_v26, 2147483647 }
 0x298   :  { %v109_v28 = vshra.s32 %v107_v27, 16  ;;  %v108_v30 = vand.u32 65535, %v107_v27 }
 0x29a   :  { %v111_v29 = vcvt.s32.f32 %v109_v28  ;;  %v110_v32 = vcvt.s32.f32 %v108_v30 }
 0x29c   :  { %112 = vmin.xlane.f32.xlu1 %v111_v29 }
 0x329   :  { %v113_v31 = vpop.xlane.xlu1 %112 }
 0x32a   :  { %vm114_vm6 = vcmp.eq.f32.partialorder %v111_v29, %v113_v31  ;;  %v119_v34 = vcvt.f32.s32 %v113_v31 }
 0x32b   :  { %v115_v33 = vsel %vm114_vm6, %v110_v32, inf }
 0x32c   :  { %116 = vmin.xlane.f32.xlu0 %v115_v33  ;;  %v120_v36 = vshll.u32 %v119_v34, 16 }
 0x3b9   :  { %v117_v35 = vpop.xlane.xlu0 %116 }
 0x3ba   :  { %v118_v37 = vcvt.f32.s32 %v117_v35 }
 0x3bc   :  { %v121_v38 = vadd.s32 %v120_v36, %v118_v37 }
 0x3be   :  { %122 = vxpose.xlu1.b32.start.end [1/1] (short) (narrow) %v121_v38, 8 }
 0x43e   :  { %v138_v39 = vpop.trf.xlu1 }
 0x43f   :  { %155 = vst.msk [vmem:[#allocation2] sm:$0x1] %vm154_vm7, %v138_v39 }
 0x440   :  { %202 = shalt.err (!%p199_p4)
}
 0x441   :  { %s203_s23 = scalar_lea.hbm %s268_s3, 16 }
 0x442   :  { %p204_p5 = scmp.ne.s32.totalorder %s268_s3, %s203_s23  ;;  %p207_p6 = scmp.lt.u32.totalorder %s203_s23, %s268_s3 }
 0x444   :  { %p209_p7 = pnand %p207_p6, %p204_p5 }
 0x446   :  { %212 = shalt.err (!%p209_p7)
}
 0x447   :  { %165 = dma.vmem_to_hbm [thread:$0]  %s163_s18, 16, %s268_s3, [#allocation3]  }
 0x448   :  { %213 = dma.done.wait [#allocation3], 16  }
 0x449   :  { %214 = vsyncadd [#allocation3], 4294967280 }
 0x44a   :  { %169 = vsyncpa [#allocation3], 1 }

</bundles_post_ra>
